<compile_context>
chip_gen: v7x
topology: tpu7x:2x2x1
jax: 0.10.0
libtpu: 0.0.40
codegen_flags: <defaults>
</compile_context>

<pallas_src>
import functools

import jax
import jax.numpy as jnp
from jax.experimental import pallas as pl
from jax.experimental.pallas import tpu as pltpu


# ---------------------------------------------------------------------------
# Kernels
# ---------------------------------------------------------------------------

def _fused_gate_kernel(wb_ref, x_ref, o_ref):
    """Single-pass path: full spatial extent resident per row block.

    wb_ref : (1, 2) SMEM  -> [conv1x1 weight / S, conv1x1 bias]
    x_ref  : (TN, S) VMEM
    o_ref  : (TN, S) VMEM
    """
    # Row sum in f32 (1/S already folded into wb[0,0]).  The ref is read
    # separately for the reduction and the multiply so no full f32 tile stays
    # live across the XLU reduce.
    row_sum = jnp.sum(x_ref[...], axis=-1, keepdims=True, dtype=jnp.float32)
    gate = jax.nn.sigmoid(wb_ref[0, 0] * row_sum + wb_ref[0, 1])
    # Multiply in the input dtype; cast only the tiny (TN, 1) gate down.
    o_ref[...] = x_ref[...] * gate.astype(o_ref.dtype)


def _row_gate_kernel(tile_s, s_total, need_mask, wb_ref, x_ref, gate_ref):
    """Fallback pass 1: accumulate per-row sums over the S grid axis and emit
    the sigmoid gate directly on the last reduction step.

    gate_ref : (TN, 1) f32 output, revisited across the j axis (accumulator).
    """
    j = pl.program_id(1)

    @pl.when(j == 0)
    def _():
        gate_ref[...] = jnp.zeros_like(gate_ref)

    x = x_ref[...]
    if need_mask:
        # Tail S-block: lanes >= S hold garbage from the padded edge block;
        # zero them so they contribute nothing to the sum.
        col = jax.lax.broadcasted_iota(jnp.int32, x.shape, 1) + j * tile_s
        x = jnp.where(col < s_total, x, jnp.zeros_like(x))
    gate_ref[...] += jnp.sum(x, axis=-1, keepdims=True, dtype=jnp.float32)

    @pl.when(j == pl.num_programs(1) - 1)
    def _():
        gate_ref[...] = jax.nn.sigmoid(wb_ref[0, 0] * gate_ref[...]
                                       + wb_ref[0, 1])


def _apply_gate_kernel(gate_ref, x_ref, o_ref):
    """Fallback pass 2: broadcast-multiply each row by its precomputed gate."""
    o_ref[...] = x_ref[...] * gate_ref[...].astype(o_ref.dtype)


# ---------------------------------------------------------------------------
# Tiling helpers (trace-time Python)
# ---------------------------------------------------------------------------

def _round_up(v, m):
    return ((v + m - 1) // m) * m


def _round_down(v, m):
    return (v // m) * m


def _generation_params():
    """Generation-aware DMA/VMEM budgets, queried at trace time."""
    vmem_bytes = 64 << 20  # conservative default (v7x per-TC VMEM)
    try:
        info = pltpu.get_tpu_info()
        vmem_bytes = int(getattr(info, "vmem_capacity_bytes", vmem_bytes))
    except Exception:
        pass
    if vmem_bytes >= (96 << 20):
        # v5e / v6e: 128 MiB physical VMEM, single TensorCore.
        return {
            "target_block_bytes": 8 << 20,
            "max_block_bytes": 20 << 20,
            "vmem_cap_bytes": 100 << 20,
            "min_grid_steps": 1,
        }
    # v7x: 64 MiB per TensorCore, 2 TCs -> keep >=4 grid steps on the
    # parallel axis and a tighter VMEM cap.
    return {
        "target_block_bytes": 5 << 20,
        "max_block_bytes": 8 << 20,
        "vmem_cap_bytes": 48 << 20,
        "min_grid_steps": 4,
    }


def _pick_main_row_tile(n, row_bytes, target_bytes, min_steps):
    """Row tile for the fused path: multiple of 8 near the byte target,
    decoupled from N's divisor structure (grid uses cdiv)."""
    fit = max(1, target_bytes // max(1, row_bytes))
    if fit >= n and min_steps <= 1:
        return n                                   # single full-array block
    tile = max(8, _round_down(min(fit, n), 8))
    if min_steps > 1 and n >= min_steps * 8:
        # Keep enough grid steps to feed both v7x TensorCores with pipelining.
        tile = min(tile, max(8, _round_down(n // min_steps, 8)))
    return n if tile >= n else tile


def _pick_fallback_tiles(n, s, itemsize, target_bytes, min_steps,
                         max_lane_tile=8192):
    """Lane-dense-first tiles for the S-tiled fallback."""
    budget_lanes = max(128, _round_down(target_bytes // (8 * itemsize), 128))
    tile_s = min(budget_lanes, max_lane_tile, _round_up(s, 128))
    tile_n = max(8, _round_down(target_bytes // (tile_s * itemsize), 8))
    tile_n = min(tile_n, _round_up(n, 8))
    if min_steps > 1 and n >= min_steps * 8:
        tile_n = min(tile_n, max(8, _round_down(n // min_steps, 8)))
    return tile_n, tile_s


def _vmem_limit(block_bytes, cap_bytes):
    # ~25% headroom over double-buffered in+out (4x block), floor at the
    # 32 MiB scoped default, capped per generation.
    return int(min(cap_bytes, max(32 << 20, 5 * block_bytes)))


# ---------------------------------------------------------------------------
# Forward wrapper
# ---------------------------------------------------------------------------

def attention_forward(x, conv_weight, conv_bias, *,
                      target_block_bytes=None, max_block_bytes=None):
    """x: (b, c, w, h). conv_weight / conv_bias: scalars of the 1x1 conv."""
    b, c, w, h = x.shape
    N = b * c
    S = w * h
    itemsize = jnp.dtype(x.dtype).itemsize

    gen = _generation_params()
    if target_block_bytes is None:
        target_block_bytes = gen["target_block_bytes"]
    if max_block_bytes is None:
        max_block_bytes = gen["max_block_bytes"]
    vmem_cap = gen["vmem_cap_bytes"]
    min_steps = gen["min_grid_steps"]

    x2d = x.reshape(N, S)

    # Fold 1/S into the conv weight: gate = sigmoid((w/S) * row_sum + b).
    wb = jnp.stack([
        jnp.asarray(conv_weight, jnp.float32).reshape(()) / jnp.float32(S),
        jnp.asarray(conv_bias, jnp.float32).reshape(()),
    ]).reshape(1, 2)

    # --------------------------- main (fused) path ---------------------------
    row_bytes = S * itemsize
    tile_n = _pick_main_row_tile(N, row_bytes, target_block_bytes, min_steps)

    if tile_n * row_bytes <= max_block_bytes:
        block_bytes = tile_n * row_bytes
        out2d = pl.pallas_call(
            _fused_gate_kernel,
            out_shape=jax.ShapeDtypeStruct((N, S), x.dtype),
            grid=(pl.cdiv(N, tile_n),),
            in_specs=[
                pl.BlockSpec((1, 2), lambda i: (0, 0),
                             memory_space=pltpu.SMEM),
                pl.BlockSpec((tile_n, S), lambda i: (i, 0)),
            ],
            out_specs=pl.BlockSpec((tile_n, S), lambda i: (i, 0)),
            compiler_params=pltpu.CompilerParams(
                dimension_semantics=("parallel",),
                vmem_limit_bytes=_vmem_limit(block_bytes, vmem_cap),
            ),
        )(wb, x2d)
        return out2d.reshape(b, c, w, h)

    # ----------------------- large-S fallback (S-tiled) ----------------------
    # Two passes over x, no padding / slicing (minimal 2 reads + 1 write of x):
    #   pass 1: masked row-sum reduction over S blocks, gate emitted in-kernel.
    #   pass 2: broadcast-multiply by the (N, 1) gate.
    tile_n, tile_s = _pick_fallback_tiles(N, S, itemsize,
                                          target_block_bytes, min_steps)
    grid = (pl.cdiv(N, tile_n), pl.cdiv(S, tile_s))
    block_bytes = tile_n * tile_s * itemsize
    vmem_limit = _vmem_limit(block_bytes, vmem_cap)
    need_mask = (S % tile_s) != 0

    gate = pl.pallas_call(
        functools.partial(_row_gate_kernel, tile_s, S, need_mask),
        out_shape=jax.ShapeDtypeStruct((N, 1), jnp.float32),
        grid=grid,
        in_specs=[
            pl.BlockSpec((1, 2), lambda i, j: (0, 0),
                         memory_space=pltpu.SMEM),
            pl.BlockSpec((tile_n, tile_s), lambda i, j: (i, j)),
        ],
        out_specs=pl.BlockSpec((tile_n, 1), lambda i, j: (i, 0)),
        compiler_params=pltpu.CompilerParams(
            dimension_semantics=("parallel", "arbitrary"),
            vmem_limit_bytes=vmem_limit,
        ),
    )(wb, x2d)

    out2d = pl.pallas_call(
        _apply_gate_kernel,
        out_shape=jax.ShapeDtypeStruct((N, S), x.dtype),
        grid=grid,
        in_specs=[
            pl.BlockSpec((tile_n, 1), lambda i, j: (i, 0)),
            pl.BlockSpec((tile_n, tile_s), lambda i, j: (i, j)),
        ],
        out_specs=pl.BlockSpec((tile_n, tile_s), lambda i, j: (i, j)),
        compiler_params=pltpu.CompilerParams(
            dimension_semantics=("parallel", "parallel"),
            vmem_limit_bytes=vmem_limit,
        ),
    )(gate, x2d)

    return out2d.reshape(b, c, w, h)


def attention_reference(x, conv_weight, conv_bias):
    b, c, w, h = x.shape
    x2d = x.reshape(b * c, w * h)
    mean = jnp.mean(x2d, axis=-1, keepdims=True)
    gate = jax.nn.sigmoid(conv_weight * mean + conv_bias)
    return (x2d * gate).reshape(b, c, w, h)


if __name__ == "__main__":
    key = jax.random.PRNGKey(0)
    kx, kw, kb, kx2, kx3 = jax.random.split(key, 5)

    # Deterministic init of nn.Conv2d(1, 1, 1) params (scalar weight + bias).
    conv_weight = jax.random.uniform(kw, (), jnp.float32, -1.0, 1.0)
    conv_bias = jax.random.uniform(kb, (), jnp.float32, -1.0, 1.0)

    # 1) Main fused path, small shape (b, c, w, h) = (2, 4, 16, 16).
    x = jax.random.normal(kx, (2, 4, 16, 16), dtype=jnp.float32)
    ref = attention_reference(x, conv_weight, conv_bias)
    out = jax.block_until_ready(attention_forward(x, conv_weight, conv_bias))
    assert out.shape == x.shape
    assert jnp.allclose(out, ref, atol=1e-5, rtol=1e-5)

    # 2) Force the large-S fallback (S-tiled two-pass, exact 128-lane tiling).
    out_fb = jax.block_until_ready(
        attention_forward(x, conv_weight, conv_bias,
                          target_block_bytes=4096, max_block_bytes=4096))
    assert jnp.allclose(out_fb, ref, atol=1e-5, rtol=1e-5)

    # 3) Fallback with a non-multiple-of-128 spatial size and multiple S steps
    #    (exercises the in-kernel tail-block masking, no padding/slicing).
    x_odd = jax.random.normal(kx2, (2, 4, 20, 20), dtype=jnp.float32)
    ref_odd = attention_reference(x_odd, conv_weight, conv_bias)
    out_odd = jax.block_until_ready(
        attention_forward(x_odd, conv_weight, conv_bias,
                          target_block_bytes=2048, max_block_bytes=2048))
    assert jnp.allclose(out_odd, ref_odd, atol=1e-5, rtol=1e-5)

    # 4) Main path with N not a multiple of tile_n (cdiv grid, padded tail
    #    row-block whose out-of-bounds writes are dropped).
    x_edge = jax.random.normal(kx3, (2, 12, 16, 16), dtype=jnp.float32)
    ref_edge = attention_reference(x_edge, conv_weight, conv_bias)
    out_edge = jax.block_until_ready(
        attention_forward(x_edge, conv_weight, conv_bias,
                          target_block_bytes=16 * 1024,
                          max_block_bytes=16 * 1024))
    assert jnp.allclose(out_edge, ref_edge, atol=1e-5, rtol=1e-5)

    print("KERNEL_OK")
</pallas_src>

<mosaic_0001>
module attributes {stable_mosaic.version = 11 : i64} {
  func.func @_fused_gate_kernel(%arg0: i32, %arg1: memref<1x2xf32, #tpu.memory_space<smem>>, %arg2: memref<8x256xf32, #tpu.memory_space<vmem>>, %arg3: memref<8x256xf32, #tpu.memory_space<vmem>>) attributes {dimension_semantics = [#tpu.dimension_semantics<parallel>], iteration_bounds = array<i64: 1>, scalar_prefetch = 0 : i64, scratch_operands = 0 : i64, tpu.core_type = #tpu.core_type<tc>, window_params = [{transform_indices = @transform_0, window_bounds = array<i64: 1, 2>}, {transform_indices = @transform_1, window_bounds = array<i64: 8, 256>}, {transform_indices = @transform_2, window_bounds = array<i64: 8, 256>}]} {
    %c0 = arith.constant 0 : index
    %c0_0 = arith.constant 0 : index
    %0 = vector.load %arg2[%c0, %c0_0] : memref<8x256xf32, #tpu.memory_space<vmem>>, vector<8x256xf32>
    %cst = arith.constant dense<0.000000e+00> : vector<8xf32>
    %1 = vector.multi_reduction <add>, %0, %cst [1] : vector<8x256xf32> to vector<8xf32>
    %2 = vector.shape_cast %1 : vector<8xf32> to vector<8x1xf32>
    %c0_1 = arith.constant 0 : index
    %c0_2 = arith.constant 0 : index
    %3 = memref.load %arg1[%c0_1, %c0_2] : memref<1x2xf32, #tpu.memory_space<smem>>
    %4 = vector.broadcast %3 : f32 to vector<8x1xf32>
    %5 = arith.mulf %4, %2 : vector<8x1xf32>
    %c0_3 = arith.constant 0 : index
    %c1 = arith.constant 1 : index
    %6 = memref.load %arg1[%c0_3, %c1] : memref<1x2xf32, #tpu.memory_space<smem>>
    %7 = vector.broadcast %6 : f32 to vector<8x1xf32>
    %8 = arith.addf %5, %7 : vector<8x1xf32>
    %9 = arith.negf %8 : vector<8x1xf32>
    %10 = math.exp %9 : vector<8x1xf32>
    %cst_4 = arith.constant 1.000000e+00 : f32
    %11 = vector.broadcast %cst_4 : f32 to vector<8x1xf32>
    %12 = arith.addf %11, %10 : vector<8x1xf32>
    %13 = arith.divf %11, %12 : vector<8x1xf32>
    %c0_5 = arith.constant 0 : index
    %c0_6 = arith.constant 0 : index
    %14 = vector.load %arg2[%c0_5, %c0_6] : memref<8x256xf32, #tpu.memory_space<vmem>>, vector<8x256xf32>
    %15 = vector.broadcast %13 : vector<8x1xf32> to vector<8x256xf32>
    %16 = arith.mulf %14, %15 : vector<8x256xf32>
    %c0_7 = arith.constant 0 : index
    %c0_8 = arith.constant 0 : index
    %17 = vector.load %arg3[%c0_7, %c0_8] : memref<8x256xf32, #tpu.memory_space<vmem>>, vector<8x256xf32>
    tpu.vector_store %arg3[%c0_7, %c0_8], %16 {strides = array<i32>} : memref<8x256xf32, #tpu.memory_space<vmem>>, vector<8x256xf32>,
    return
  }
  func.func @transform_0(%arg0: i32) -> (i32, i32) {
    %c0_i32 = arith.constant 0 : i32
    %c0_i32_0 = arith.constant 0 : i32
    %c0_i32_1 = arith.constant 0 : i32
    return %c0_i32, %c0_i32_0 : i32, i32
  }
  func.func @transform_1(%arg0: i32) -> (i32, i32) {
    %c0_i32 = arith.constant 0 : i32
    %c0_i32_0 = arith.constant 0 : i32
    return %arg0, %c0_i32 : i32, i32
  }
  func.func @transform_2(%arg0: i32) -> (i32, i32) {
    %c0_i32 = arith.constant 0 : i32
    %c0_i32_0 = arith.constant 0 : i32
    return %arg0, %c0_i32 : i32, i32
  }
}

</mosaic_0001>

<bundles_post_ra>
// kernel: tpu_custom_call.1
= control target key start
LH: loop header
LB: loop body
LE: loop exit
PB: predicated region body
PF: predicated region fallthrough
CT: control target
= control target key end

     0   :  { %7 = vsyncpa [#allocation5], 0  ;;  %s195_s0 = inlined_call_operand.hbm [shape: f32[1,2], index: 0, kind: input, shape index: {}]   ;;  %s196_s1 = inlined_call_operand.hbm [shape: f32[8,256], index: 1, kind: input, shape index: {}]   ;;  %s197_s2 = inlined_call_operand.hbm [shape: f32[8,256], index: 2, kind: output, shape index: {}]  }
   0x1   :  { %8 = vsyncpa [#allocation3], 0 }
   0x2   :  { %9 = vsyncpa [#allocation4], 0  ;;  %s81_s11 = scalar_lea.hbm %s195_s0, 16 }
   0x3   :  { %p82_p0 = scmp.ne.s32.totalorder %s195_s0, %s81_s11  ;;  %p85_p1 = scmp.lt.u32.totalorder %s81_s11, %s195_s0 }
   0x5   :  { %p87_p2 = pnand %p85_p1, %p82_p0 }
   0x7   :  { %90 = shalt.err (!%p87_p2)
}
   0x8   :  { %s141_s16 = smov [#allocation2]   ;;  %s142_s19 = smov [#allocation6]  }
   0x9   :  { %17 = dma.hbm_to_smem %s195_s0, 16, %s141_s16, [#allocation5]  }
   0xa   :  { %s24_s20 = sshll.u32 %s142_s19, 4  ;;  %s91_s23 = scalar_lea.hbm %s196_s1, 256  ;;  %s25_s20 = int_to_ptr.vmem [resolvable:$true] %s24_s20 }
   0xb   :  { %p92_p3 = scmp.ne.s32.totalorder %s196_s1, %s91_s23  ;;  %p95_p4 = scmp.lt.u32.totalorder %s91_s23, %s196_s1 }
   0xd   :  { %p97_p5 = pnand %p95_p4, %p92_p3 }
   0xf   :  { %100 = shalt.err (!%p97_p5)
}
  0x10   :  { %s101_s28 = scalar_lea.vmem %s25_s20, 256  ;;  %p106_p7 = scmp.lt.s32.totalorder %s25_s20, %s25_s20 }
  0x11   :  { %p102_p6 = scmp.ne.s32.totalorder %s25_s20, %s101_s28  ;;  %p107_p8 = scmp.lt.s32.totalorder %s101_s28, %s101_s28 }
  0x13   :  { %p108_p9 = por %p107_p8, %p106_p7 }
  0x15   :  { %p109_p10 = pnand %p108_p9, %p102_p6 }
  0x17   :  { %112 = shalt.err (!%p109_p10)
}
  0x18   :  { %27 = dma.hbm_to_vmem [thread:$0]  %s196_s1, 256, %s25_s20, [#allocation3]  }
  0x19   :  { %135 = dma.done.wait [#allocation5], 16  }
  0x1a   :  { %136 = vsyncadd [#allocation5], 4294967280 }
  0x1b   :  { %137 = dma.done.wait [#allocation3], 256  }
  0x1c   :  { %138 = vsyncadd [#allocation3], 4294967040 }
  0x1d   :  { %34 = sfence }
  0x1e   :  { %v35_v0 = vld [vmem:[#allocation6] sm:$0xff]  ;;  %v36_v1 = vld [vmem:[#allocation6 + $0x8] sm:$0xff]  ;;  %s40_s30 = sld [smem:[#allocation2]]  ;;  %s72_s3 = sld [smem:[#allocation2 + $0x1]] }
  0x1f   :  { %v37_v2 = vadd.f32 %v36_v1, %v35_v0  ;;  %s143_s1 = smov [#allocation7]  }
  0x20   :  { %s62_s4 = sshll.u32 %s143_s1, 4  ;;  %s63_s4 = int_to_ptr.vmem [resolvable:$true] %s62_s4 }
  0x21   :  { %38 = vadd.xlane.f32.xlu0 %v37_v2  ;;  %s113_s5 = scalar_lea.vmem %s63_s4, 256  ;;  %p118_p12 = scmp.lt.s32.totalorder %s63_s4, %s63_s4 }
  0x22   :  { %p114_p11 = scmp.ne.s32.totalorder %s63_s4, %s113_s5  ;;  %p119_p13 = scmp.lt.s32.totalorder %s113_s5, %s113_s5 }
  0x24   :  { %v41_v3 = vstv %s40_s30  ;;  %v44_v5 = vstv %s72_s3  ;;  %p120_p0 = por %p119_p13, %p118_p12 }
  0x26   :  { %p121_p1 = pnand %p120_p0, %p114_p11 }
  0xae   :  { %v39_v4 = vpop.xlane.xlu0 %38 }
  0xaf   :  { %v42_v6 = vmul.f32 %v41_v3, %v39_v4 }
  0xb1   :  { %v45_v7 = vadd.f32 %v44_v5, %v42_v6 }
  0xb3   :  { %v73_v8 = vmul.f32 -1.442695, %v45_v7 }
  0xb5   :  { %77 = vpow2.f32 %v73_v8 }
  0xbf   :  { %v78_v9 = vpop.eup %77 }
  0xc0   :  { %v49_v10 = vadd.f32 1.0, %v78_v9 }
  0xc2   :  { %79 = vrcp.f32 %v49_v10 }
  0xcc   :  { %v80_v11 = vpop.eup %79 }
  0xcd   :  { %v52_v12 = vmul.f32 %v80_v11, %v35_v0  ;;  %v53_v13 = vmul.f32 %v80_v11, %v36_v1 }
  0xcf   :  { %54 = vst [vmem:[#allocation7] sm:$0xff] %v52_v12  ;;  %55 = vst [vmem:[#allocation7 + $0x8] sm:$0xff] %v53_v13 }
  0xd0   :  { %124 = shalt.err (!%p121_p1)
}
  0xd1   :  { %s125_s8 = scalar_lea.hbm %s197_s2, 256 }
  0xd2   :  { %p126_p2 = scmp.ne.s32.totalorder %s197_s2, %s125_s8  ;;  %p129_p3 = scmp.lt.u32.totalorder %s125_s8, %s197_s2 }
  0xd4   :  { %p131_p4 = pnand %p129_p3, %p126_p2 }
  0xd6   :  { %134 = shalt.err (!%p131_p4)
}
  0xd7   :  { %65 = dma.vmem_to_hbm [thread:$0]  %s63_s4, 256, %s197_s2, [#allocation4]  }
  0xd8   :  { %139 = dma.done.wait [#allocation4], 256  }
  0xd9   :  { %140 = vsyncadd [#allocation4], 4294967040 }
  0xda   :  { %69 = vsyncpa [#allocation3], 1 }
  0xdb   :  { %70 = vsyncpa [#allocation4], 1 }
  0xdc   :  { %71 = vsyncpa [#allocation5], 1 }

</bundles_post_ra>
